<compile_context>
chip_gen: v5e
topology: v5e:2x2
jax: 0.10.0
libtpu: 0.0.40
codegen_flags: <defaults>
</compile_context>

<pallas_src>
import math

import numpy as np
import jax
import jax.numpy as jnp
from jax import lax
from jax.experimental import pallas as pl
from jax.experimental.pallas import tpu as pltpu


def _embed_kernel(x_ref,   # VMEM (block_rows, L)      f32   row slab: row = b*N + n
                  wv_ref,  # VMEM (L, D)               bf16/f32  value_embedding weight
                  wt_ref,  # VMEM (L, D)               bf16/f32  temporal_embedding weight
                  c_ref,   # VMEM (block_rows + 2, D)  f32   rows 0..br-1: per-row const add,
                           #                                 row br: LN gamma, row br+1: LN beta
                  o_ref):  # VMEM (block_rows, D)      f32
    br, L = x_ref.shape
    x = x_ref[...]

    # torch.gradient(x, dim=time)[0]: central differences, one-sided at edges.
    if L % 128 == 0:
        # Lane-aligned L: XLU rotates + two edge selects (no slices, no concat).
        lane = lax.broadcasted_iota(jnp.int32, (br, L), 1)
        xp1 = pltpu.roll(x, shift=L - 1, axis=-1)     # x[i+1] (wraps at i=L-1)
        xm1 = pltpu.roll(x, shift=1, axis=-1)         # x[i-1] (wraps at i=0)
        g = 0.5 * (xp1 - xm1)
        g = jnp.where(lane == 0, xp1 - x, g)          # x[1] - x[0]
        g = jnp.where(lane == L - 1, x - xm1, g)      # x[L-1] - x[L-2]
    else:
        # Small / unaligned L: shifted static slices + concat (proven lowering).
        parts = [x[:, 1:2] - x[:, 0:1]]
        if L > 2:
            parts.append(0.5 * (x[:, 2:] - x[:, :-2]))
        parts.append(x[:, L - 1:L] - x[:, L - 2:L - 1])
        g = jnp.concatenate(parts, axis=1)                            # [br, L]

    # torch.std(dim=time) is the unbiased estimator (correction=1), then +1e-5.
    mean = jnp.mean(g, axis=1, keepdims=True)
    var = jnp.sum((g - mean) ** 2, axis=1, keepdims=True) * (1.0 / (L - 1))
    inv_std = pl.reciprocal(jnp.sqrt(var) + 1e-5, approx=True)        # EUP slot
    g_n = g * inv_std

    # value + temporal embedding: two MXU calls accumulated in f32 (no lane concat).
    y = jnp.dot(x.astype(wv_ref.dtype), wv_ref[...],
                preferred_element_type=jnp.float32)
    y = y + jnp.dot(g_n.astype(wt_ref.dtype), wt_ref[...],
                    preferred_element_type=jnp.float32)               # [br, D]

    # + (b_val + b_temp + feature_embed + pos_scale * pe), pre-tiled per row.
    y = y + c_ref[0:br, :]

    # LayerNorm over d_model (eps=1e-5, biased variance) + affine gamma/beta.
    mu = jnp.mean(y, axis=-1, keepdims=True)
    v = jnp.mean((y - mu) ** 2, axis=-1, keepdims=True)
    y = (y - mu) * lax.rsqrt(v + 1e-5)
    y = y * c_ref[br:br + 1, :] + c_ref[br + 1:br + 2, :]

    # TODO(synk): dropout(p=0.1) is identity in eval mode; training-mode RNG dropout not implemented.
    o_ref[...] = y.astype(o_ref.dtype)


def _vmem_need_bytes(br, L, D, w_bytes):
    return (2 * br * L * 4            # x slab, double-buffered
            + 2 * br * D * 4          # out slab, double-buffered
            + 2 * (br + 2) * D * 4    # constants slab (assume double-buffered)
            + 2 * 2 * L * D * w_bytes)  # two weights, double-buffered


def _pick_block_rows(rows, n_var, L, D, *, target=2048, min_grid_steps=1,
                     vmem_budget=20 << 20):
    """Rows per grid step.

    Targets ~2k rows/step (measured tile-size curve: bigger blocks amortize the
    ~0.35us per-step overhead), capped by a VMEM budget that fits every
    generation's scoped limit (v7x: 64 MiB physical / 32 MiB scoped default).
    block_rows is a multiple of lcm(8, N) so blocks are sublane-aligned AND
    start on a variate boundary (needed for the pre-tiled constant add).
    min_grid_steps>1 is only useful on v7x (2 TensorCores); on v5e/v6e the grid
    is a serial loop and extra steps just add overhead.
    """
    unit = 8 * n_var // math.gcd(8, n_var)              # lcm(8, N)
    per_row = 8 * L + 16 * D                            # pipelined bytes per row
    cap_rows = max(unit, (vmem_budget // max(per_row, 1)) // unit * unit)
    br = max(unit, min(max(unit, target // unit * unit), cap_rows))
    br = min(br, pl.cdiv(rows, unit) * unit)            # never bigger than problem
    if min_grid_steps > 1 and rows > unit * min_grid_steps:
        br = min(br, max(unit, pl.cdiv(pl.cdiv(rows, min_grid_steps), unit) * unit))
    return br


def data_embedding_inverted(x, params, x_mark=None, *, block_rows=None,
                            min_grid_steps=1, use_bf16_matmul=True):
    """x: [B, L, N] float32 -> [B, N, d_model].

    x_mark is accepted but unused (the PyTorch forward never reads it).
    Set min_grid_steps=2 on v7x so both TensorCores get work.
    """
    B, L, N = x.shape
    D = params["w_val"].shape[1]
    if L < 2:
        raise ValueError("torch.gradient / unbiased std require L >= 2")
    if N > params["feat_w"].shape[0]:
        raise ValueError("feature_embedding(3, d_model) only supports N <= 3 variates")

    # One-time [B, L, N] -> [B*N, L] permute+flatten (single fused HBM pass in XLA).
    x_rows = jnp.transpose(x, (0, 2, 1)).reshape(B * N, L).astype(jnp.float32)
    rows = B * N

    br = (_pick_block_rows(rows, N, L, D, min_grid_steps=min_grid_steps)
          if block_rows is None else block_rows)
    unit = 8 * N // math.gcd(8, N)
    if br % unit:
        raise ValueError(f"block_rows must be a multiple of lcm(8, N) = {unit}")

    # Pad the row dim to a multiple of block_rows (pad rows are sliced off below).
    rows_pad = pl.cdiv(rows, br) * br
    if rows_pad != rows:
        x_rows = jnp.pad(x_rows, ((0, rows_pad - rows), (0, 0)))
    grid = (rows_pad // br,)

    w_dtype = jnp.bfloat16 if use_bf16_matmul else jnp.float32
    w_val = params["w_val"].astype(w_dtype)            # (L, D)
    w_temp = params["w_temp"].astype(w_dtype)          # (L, D)

    # Constant slab:
    #   rows 0..br-1 : (b_val + b_temp + feature_embed + pos_scale*pe) tiled so
    #                  row i holds the constants for variate (i % N)
    #   row  br      : LayerNorm gamma
    #   row  br+1    : LayerNorm beta
    add = (params["b_val"][None, :] + params["b_temp"][None, :]
           + params["feat_w"][:N] + params["pos_scale"][0] * params["pe"][:N])
    add_tiled = jnp.tile(add, (br // N, 1))                          # (br, D)
    cparams = jnp.concatenate(
        [add_tiled, params["gamma"].reshape(1, D), params["beta"].reshape(1, D)],
        axis=0).astype(jnp.float32)                                  # (br+2, D)

    w_bytes = 2 if use_bf16_matmul else 4
    need = _vmem_need_bytes(br, L, D, w_bytes)
    vmem_limit = int(min(64 << 20, max(2 * need + (4 << 20), 16 << 20)))

    # NOTE: D < 128 means masked (partial-lane) stores; at realistic d_model
    # (>=128) the output stores are lane-dense.  Block trailing dims equal the
    # full L / D dims and block_rows is a multiple of 8, so no (8,128) issue.
    out = pl.pallas_call(
        _embed_kernel,
        out_shape=jax.ShapeDtypeStruct((rows_pad, D), jnp.float32),
        grid_spec=pl.GridSpec(
            grid=grid,
            in_specs=[
                pl.BlockSpec((br, L), lambda r: (r, 0)),        # x row slab
                pl.BlockSpec((L, D), lambda r: (0, 0)),         # W_val   (grid-invariant)
                pl.BlockSpec((L, D), lambda r: (0, 0)),         # W_temp  (grid-invariant)
                pl.BlockSpec((br + 2, D), lambda r: (0, 0)),    # constants slab
            ],
            out_specs=pl.BlockSpec((br, D), lambda r: (r, 0)),
        ),
        compiler_params=pltpu.CompilerParams(
            dimension_semantics=("parallel",),
            vmem_limit_bytes=vmem_limit),
    )(x_rows, w_val, w_temp, cparams)

    return out[:rows].reshape(B, N, D)


def reference(x, params):
    """Pure-JAX reference mirroring the PyTorch forward."""
    B, L, N = x.shape
    g = jnp.concatenate(
        [x[:, 1:2] - x[:, 0:1],
         (x[:, 2:] - x[:, :-2]) * 0.5,
         x[:, -1:] - x[:, -2:-1]], axis=1)                            # [B, L, N]
    std = jnp.std(g, axis=1, keepdims=True, ddof=1) + 1e-5
    g = g / std
    xp = jnp.transpose(x, (0, 2, 1))                                  # [B, N, L]
    gp = jnp.transpose(g, (0, 2, 1))                                  # [B, N, L]
    val = jnp.einsum("bnl,ld->bnd", xp, params["w_val"]) + params["b_val"]
    tmp = jnp.einsum("bnl,ld->bnd", gp, params["w_temp"]) + params["b_temp"]
    y = val + tmp + params["feat_w"][:N][None] + params["pos_scale"][0] * params["pe"][:N][None]
    mu = jnp.mean(y, axis=-1, keepdims=True)
    v = jnp.mean((y - mu) ** 2, axis=-1, keepdims=True)
    y = (y - mu) / jnp.sqrt(v + 1e-5)
    return y * params["gamma"] + params["beta"]


def make_params(c_in, d_model, max_len=60, seed=0):
    key = jax.random.PRNGKey(seed)
    ks = jax.random.split(key, 5)
    # sinusoidal positional encoding buffer (as in __init__)
    position = np.arange(max_len, dtype=np.float32)[:, None]
    div_term = np.exp(np.arange(0, d_model, 2, dtype=np.float32)
                      * (-math.log(10000.0) / d_model))
    pe = np.zeros((max_len, d_model), np.float32)
    pe[:, 0::2] = np.sin(position * div_term)
    pe[:, 1::2] = np.cos(position * div_term)
    return {
        "w_val":  (jax.random.normal(ks[0], (c_in, d_model), jnp.float32) * 0.1),
        "b_val":  (jax.random.normal(ks[1], (d_model,), jnp.float32) * 0.1),
        "w_temp": (jax.random.normal(ks[2], (c_in, d_model), jnp.float32) * 0.1),
        "b_temp": (jax.random.normal(ks[3], (d_model,), jnp.float32) * 0.1),
        "feat_w": (jax.random.normal(ks[4], (3, d_model), jnp.float32) * 0.1),
        "pe":     jnp.asarray(pe),
        "pos_scale": jnp.ones((1,), jnp.float32),
        "gamma":  jnp.ones((d_model,), jnp.float32),
        "beta":   jnp.zeros((d_model,), jnp.float32),
    }


if __name__ == "__main__":
    B, L, N, D = 2, 16, 3, 32          # c_in = L = 16, d_model = 32, N <= 3 (Embedding(3, d_model))
    key = jax.random.PRNGKey(0)
    kx, km = jax.random.split(key)
    x = jax.random.normal(kx, (B, L, N), jnp.float32)
    x_mark = jax.random.normal(km, (B, L, 4), jnp.float32)   # unused by forward, signature parity

    params = make_params(c_in=L, d_model=D)

    out = jax.block_until_ready(data_embedding_inverted(x, params, x_mark))
    ref = reference(x, params)
    assert out.shape == (B, N, D)
    assert jnp.allclose(out, ref, atol=2e-2, rtol=2e-2), "kernel/reference mismatch"
    print("KERNEL_OK")
</pallas_src>

<mosaic_0001>
module attributes {stable_mosaic.version = 11 : i64} {
  func.func @_embed_kernel(%arg0: i32, %arg1: memref<24x16xf32, #tpu.memory_space<vmem>>, %arg2: memref<16x32xbf16, #tpu.memory_space<vmem>>, %arg3: memref<16x32xbf16, #tpu.memory_space<vmem>>, %arg4: memref<26x32xf32, #tpu.memory_space<vmem>>, %arg5: memref<24x32xf32, #tpu.memory_space<vmem>>) attributes {dimension_semantics = [#tpu.dimension_semantics<parallel>], iteration_bounds = array<i64: 1>, scalar_prefetch = 0 : i64, scratch_operands = 0 : i64, tpu.core_type = #tpu.core_type<tc>, window_params = [{transform_indices = @transform_0, window_bounds = array<i64: 24, 16>}, {pipeline_mode = #tpu.pipeline_mode<synchronous>, transform_indices = @transform_1, window_bounds = array<i64: 16, 32>}, {pipeline_mode = #tpu.pipeline_mode<synchronous>, transform_indices = @transform_2, window_bounds = array<i64: 16, 32>}, {pipeline_mode = #tpu.pipeline_mode<synchronous>, transform_indices = @transform_3, window_bounds = array<i64: 26, 32>}, {transform_indices = @transform_4, window_bounds = array<i64: 24, 32>}]} {
    %c0 = arith.constant 0 : index
    %c0_0 = arith.constant 0 : index
    %0 = vector.load %arg1[%c0, %c0_0] : memref<24x16xf32, #tpu.memory_space<vmem>>, vector<24x16xf32>
    %1 = vector.extract_strided_slice %0 {offsets = [0, 1], sizes = [24, 1], strides = [1, 1]} : vector<24x16xf32> to vector<24x1xf32>
    %2 = vector.extract_strided_slice %0 {offsets = [0, 0], sizes = [24, 1], strides = [1, 1]} : vector<24x16xf32> to vector<24x1xf32>
    %3 = arith.subf %1, %2 : vector<24x1xf32>
    %4 = vector.extract_strided_slice %0 {offsets = [0, 2], sizes = [24, 14], strides = [1, 1]} : vector<24x16xf32> to vector<24x14xf32>
    %5 = vector.extract_strided_slice %0 {offsets = [0, 0], sizes = [24, 14], strides = [1, 1]} : vector<24x16xf32> to vector<24x14xf32>
    %6 = arith.subf %4, %5 : vector<24x14xf32>
    %cst = arith.constant 5.000000e-01 : f32
    %7 = vector.broadcast %cst : f32 to vector<24x14xf32>
    %8 = arith.mulf %7, %6 : vector<24x14xf32>
    %9 = vector.extract_strided_slice %0 {offsets = [0, 15], sizes = [24, 1], strides = [1, 1]} : vector<24x16xf32> to vector<24x1xf32>
    %10 = vector.extract_strided_slice %0 {offsets = [0, 14], sizes = [24, 1], strides = [1, 1]} : vector<24x16xf32> to vector<24x1xf32>
    %11 = arith.subf %9, %10 : vector<24x1xf32>
    %12 = tpu.concatenate %3, %8, %11 in 1 : vector<24x1xf32>, vector<24x14xf32>, vector<24x1xf32> -> vector<24x16xf32>
    %cst_1 = arith.constant dense<0.000000e+00> : vector<24xf32>
    %13 = vector.multi_reduction <add>, %12, %cst_1 [1] : vector<24x16xf32> to vector<24xf32>
    %14 = vector.shape_cast %13 : vector<24xf32> to vector<24x1xf32>
    %cst_2 = arith.constant 1.600000e+01 : f32
    %15 = vector.broadcast %cst_2 : f32 to vector<24x1xf32>
    %16 = arith.divf %14, %15 : vector<24x1xf32>
    %17 = vector.broadcast %16 : vector<24x1xf32> to vector<24x16xf32>
    %18 = arith.subf %12, %17 : vector<24x16xf32>
    %19 = arith.mulf %18, %18 : vector<24x16xf32>
    %cst_3 = arith.constant dense<0.000000e+00> : vector<24xf32>
    %20 = vector.multi_reduction <add>, %19, %cst_3 [1] : vector<24x16xf32> to vector<24xf32>
    %21 = vector.shape_cast %20 : vector<24xf32> to vector<24x1xf32>
    %cst_4 = arith.constant 0.0666666701 : f32
    %22 = vector.broadcast %cst_4 : f32 to vector<24x1xf32>
    %23 = arith.mulf %21, %22 : vector<24x1xf32>
    %24 = math.sqrt %23 : vector<24x1xf32>
    %cst_5 = arith.constant 9.99999974E-6 : f32
    %25 = vector.broadcast %cst_5 : f32 to vector<24x1xf32>
    %26 = arith.addf %24, %25 : vector<24x1xf32>
    %27 = tpu.reciprocal %26 {approx = true} : vector<24x1xf32> -> vector<24x1xf32>
    %28 = vector.broadcast %27 : vector<24x1xf32> to vector<24x16xf32>
    %29 = arith.mulf %12, %28 : vector<24x16xf32>
    %30 = arith.truncf %0 : vector<24x16xf32> to vector<24x16xbf16>
    %c0_6 = arith.constant 0 : index
    %c0_7 = arith.constant 0 : index
    %31 = vector.load %arg2[%c0_6, %c0_7] : memref<16x32xbf16, #tpu.memory_space<vmem>>, vector<16x32xbf16>
    %cst_8 = arith.constant dense<0.000000e+00> : vector<24x32xf32>
    %32 = tpu.matmul %30, %31, %cst_8 {dimension_numbers = #tpu.dot_dimension_numbers<[1], [0], [0], [1], [0, 0, 1, 1], [], []>} : vector<24x16xbf16>, vector<16x32xbf16>, vector<24x32xf32> -> vector<24x32xf32>
    %33 = arith.truncf %29 : vector<24x16xf32> to vector<24x16xbf16>
    %c0_9 = arith.constant 0 : index
    %c0_10 = arith.constant 0 : index
    %34 = vector.load %arg3[%c0_9, %c0_10] : memref<16x32xbf16, #tpu.memory_space<vmem>>, vector<16x32xbf16>
    %cst_11 = arith.constant dense<0.000000e+00> : vector<24x32xf32>
    %35 = tpu.matmul %33, %34, %cst_11 {dimension_numbers = #tpu.dot_dimension_numbers<[1], [0], [0], [1], [0, 0, 1, 1], [], []>} : vector<24x16xbf16>, vector<16x32xbf16>, vector<24x32xf32> -> vector<24x32xf32>
    %36 = arith.addf %32, %35 : vector<24x32xf32>
    %c0_12 = arith.constant 0 : index
    %c0_13 = arith.constant 0 : index
    %37 = vector.load %arg4[%c0_12, %c0_13] : memref<26x32xf32, #tpu.memory_space<vmem>>, vector<24x32xf32>
    %38 = arith.addf %36, %37 : vector<24x32xf32>
    %cst_14 = arith.constant dense<0.000000e+00> : vector<24xf32>
    %39 = vector.multi_reduction <add>, %38, %cst_14 [1] : vector<24x32xf32> to vector<24xf32>
    %40 = vector.shape_cast %39 : vector<24xf32> to vector<24x1xf32>
    %cst_15 = arith.constant 3.200000e+01 : f32
    %41 = vector.broadcast %cst_15 : f32 to vector<24x1xf32>
    %42 = arith.divf %40, %41 : vector<24x1xf32>
    %43 = vector.broadcast %42 : vector<24x1xf32> to vector<24x32xf32>
    %44 = arith.subf %38, %43 : vector<24x32xf32>
    %45 = arith.mulf %44, %44 : vector<24x32xf32>
    %cst_16 = arith.constant dense<0.000000e+00> : vector<24xf32>
    %46 = vector.multi_reduction <add>, %45, %cst_16 [1] : vector<24x32xf32> to vector<24xf32>
    %47 = vector.shape_cast %46 : vector<24xf32> to vector<24x1xf32>
    %cst_17 = arith.constant 3.200000e+01 : f32
    %48 = vector.broadcast %cst_17 : f32 to vector<24x1xf32>
    %49 = arith.divf %47, %48 : vector<24x1xf32>
    %50 = vector.broadcast %42 : vector<24x1xf32> to vector<24x32xf32>
    %51 = arith.subf %38, %50 : vector<24x32xf32>
    %cst_18 = arith.constant 9.99999974E-6 : f32
    %52 = vector.broadcast %cst_18 : f32 to vector<24x1xf32>
    %53 = arith.addf %49, %52 : vector<24x1xf32>
    %54 = math.rsqrt %53 : vector<24x1xf32>
    %55 = vector.broadcast %54 : vector<24x1xf32> to vector<24x32xf32>
    %56 = arith.mulf %51, %55 : vector<24x32xf32>
    %c24 = arith.constant 24 : index
    %c0_19 = arith.constant 0 : index
    %57 = vector.load %arg4[%c24, %c0_19] : memref<26x32xf32, #tpu.memory_space<vmem>>, vector<1x32xf32>
    %58 = vector.broadcast %57 : vector<1x32xf32> to vector<24x32xf32>
    %59 = arith.mulf %56, %58 : vector<24x32xf32>
    %c25 = arith.constant 25 : index
    %c0_20 = arith.constant 0 : index
    %60 = vector.load %arg4[%c25, %c0_20] : memref<26x32xf32, #tpu.memory_space<vmem>>, vector<1x32xf32>
    %61 = vector.broadcast %60 : vector<1x32xf32> to vector<24x32xf32>
    %62 = arith.addf %59, %61 : vector<24x32xf32>
    %c0_21 = arith.constant 0 : index
    %c0_22 = arith.constant 0 : index
    %63 = vector.load %arg5[%c0_21, %c0_22] : memref<24x32xf32, #tpu.memory_space<vmem>>, vector<24x32xf32>
    tpu.vector_store %arg5[%c0_21, %c0_22], %62 {strides = array<i32>} : memref<24x32xf32, #tpu.memory_space<vmem>>, vector<24x32xf32>,
    return
  }
  func.func @transform_0(%arg0: i32) -> (i32, i32) {
    %c0_i32 = arith.constant 0 : i32
    %c0_i32_0 = arith.constant 0 : i32
    return %arg0, %c0_i32 : i32, i32
  }
  func.func @transform_1(%arg0: i32) -> (i32, i32) {
    %c0_i32 = arith.constant 0 : i32
    %c0_i32_0 = arith.constant 0 : i32
    %c0_i32_1 = arith.constant 0 : i32
    return %c0_i32, %c0_i32_0 : i32, i32
  }
  func.func @transform_2(%arg0: i32) -> (i32, i32) {
    %c0_i32 = arith.constant 0 : i32
    %c0_i32_0 = arith.constant 0 : i32
    %c0_i32_1 = arith.constant 0 : i32
    return %c0_i32, %c0_i32_0 : i32, i32
  }
  func.func @transform_3(%arg0: i32) -> (i32, i32) {
    %c0_i32 = arith.constant 0 : i32
    %c0_i32_0 = arith.constant 0 : i32
    %c0_i32_1 = arith.constant 0 : i32
    return %c0_i32, %c0_i32_0 : i32, i32
  }
  func.func @transform_4(%arg0: i32) -> (i32, i32) {
    %c0_i32 = arith.constant 0 : i32
    %c0_i32_0 = arith.constant 0 : i32
    return %arg0, %c0_i32 : i32, i32
  }
}

</mosaic_0001>

<bundles_post_ra>
// kernel: tpu_custom_call.1
= control target key start
LH: loop header
LB: loop body
LE: loop exit
PB: predicated region body
PF: predicated region fallthrough
CT: control target
= control target key end

     0   :  { %9 = vsyncpa [#allocation3], 0  ;;  %s597_s0 = inlined_call_operand.vmem [shape: f32[24,16], index: 0, kind: input, shape index: {}]   ;;  %s598_s1 = inlined_call_operand.vmem [shape: bf16[16,32], index: 1, kind: input, shape index: {}]   ;;  %s599_s2 = inlined_call_operand.hbm [shape: bf16[16,32], index: 2, kind: input, shape index: {}]   ;;  %s600_s3 = inlined_call_operand.vmem [shape: f32[26,32], index: 3, kind: input, shape index: {}]   ;;  %s601_s4 = inlined_call_operand.hbm [shape: f32[24,32], index: 4, kind: output, shape index: {}]  }
   0x1   :  { %10 = vsyncpa [#allocation4], 0  ;;  %s19_s17 = sshll.u32 %s599_s2, 4  ;;  %s466_s18 = smov [#allocation2]   ;;  %s20_s17 = int_to_ptr.hbm [resolvable:$true] %s19_s17 }
   0x2   :  { %s21_s19 = sshll.u32 %s466_s18, 4  ;;  %s467_s20 = smov 64   ;;  %s22_s19 = int_to_ptr.vmem [resolvable:$true] %s21_s19 }
   0x3   :  { %s468_s21 = smov 4  }
   0x4   :  { %27 = dma.hbm_to_vmem [thread:$0]  %s20_s17, 128, %s22_s19, [#allocation3], %s467_s20, %s467_s20, %s468_s21  }
   0x5   :  { %462 = dma.done.wait [#allocation3], 128  }
   0x6   :  { %463 = vsyncadd [#allocation3], 4294967168  ;;  %v508_v0 = vld [vmem:[%s597_s0] sm:$0xff]  ;;  %v513_v1 = vld [vmem:[%s597_s0 + $0x10] sm:$0xff]  ;;  %s469_s2 = smov 1   ;;  %s470_s26 = smov 2  }
   0x7   :  { %41 = vrot.lane.b32.xlu1 %v508_v0, %s469_s2  ;;  %53 = vrot.lane.b32.xlu0 %v508_v0, %s470_s26  ;;  %v521_v2 = vld [vmem:[%s597_s0 + $0x8] sm:$0xff]  ;;  %s471_s29 = smov 127   ;;  %vm92_vm0 = vcmask 7168   ;;  %vm96_vm1 = vcmask 121856   ;;  %vm100_vm2 = vcmask 130048   ;;  %v472_v33 = vmov 16.0  }
   0x8   :  { %57 = vrot.lane.b32.xlu2 %v513_v1, %s470_s26  ;;  %392 = vrcp.f32 %v472_v33  ;;  %v375_v55 = vld [vmem:[%s598_s1] sm:$0xff]  ;;  %v183_v57 = vpack.c.bf16 %v521_v2, %v508_v0  ;;  %v184_v58 = vpack.c.bf16 %v513_v1, %v513_v1  ;;  %vm257_vm10 = vcmask 261120   ;;  %s350_s17 = sshll.u32 %s601_s4, 4  ;;  %s475_s18 = smov 128   ;;  %s351_s17 = int_to_ptr.hbm [resolvable:$true] %s350_s17 }
   0x9   :  { %v376_v56 = vld [vmem:[#allocation2] sm:$0xff]  ;;  %240 = vmatpush.bf16.msra.mxu1 %v375_v55  ;;  %378 = vmatpush.bf16.msra.mxu3 %v375_v55  ;;  %s476_s19 = smov 8  }
   0xa   :  { %210 = vmatpush.bf16.msra.mxu0 %v376_v56  ;;  %377 = vmatpush.bf16.msra.mxu2 %v376_v56  ;;  %v253_v56 = vld [vmem:[%s600_s3 + $0x10] sm:$0xff] }
   0xc   :  { %373 = vmatmul.msk.bf16.vlgmr.msra.gmra.mxu1 %vm100_vm2, %v183_v57  ;;  %374 = vmatmul.msk.bf16.vlgmr.msra.gmra.mxu3 %vm100_vm2, %v184_v58 }
   0xe   :  { %v393_v34 = vpop.eup %392 }
   0xf   :  { %43 = vrot.lane.b32.xlu1 %v521_v2, %s469_s2  ;;  %55 = vrot.lane.b32.xlu0 %v521_v2, %s470_s26  ;;  %v111_v35 = vmul.f32 16.0, %v393_v34  ;;  %vm115_vm3 = vweird.f32 %v393_v34 }
  0x10   :  { %45 = vrot.lane.b32.xlu2 %v513_v1, %s469_s2 }
  0x11   :  { %v112_v36 = vsub.f32 1.0, %v111_v35 }
  0x13   :  { %v113_v37 = vmul.f32 %v393_v34, %v112_v36 }
  0x15   :  { %v114_v38 = vadd.f32 %v393_v34, %v113_v37 }
  0x17   :  { %v116_v39 = vsel %vm115_vm3, %v393_v34, %v114_v38 }
  0x62   :  { %v58_v7 = vpop.permute.xlu2 %57 }
  0x63   :  { %v64_v9 = vsub.f32 %v513_v1, %v58_v7 }
  0x65   :  { %v67_v12 = vmul.f32 0.5, %v64_v9 }
  0x6a   :  { %v46_v16 = vpop.permute.xlu2 %45 }
  0x6b   :  { %v52_v17 = vsub.f32 %v513_v1, %v46_v16 }
  0x79   :  { %v42_v3 = vpop.permute.xlu1 %41  ;;  %v54_v4 = vpop.permute.xlu0 %53 }
  0x7a   :  { %v50_v5 = vsub.f32 %v508_v0, %v42_v3  ;;  %v62_v6 = vsub.f32 %v508_v0, %v54_v4 }
  0x7c   :  { %v65_v8 = vmul.f32 0.5, %v62_v6  ;;  %71 = vrot.lane.b32.xlu0 %v50_v5, %s471_s29 }
  0x7e   :  { %83 = vrot.lane.b32.xlu2 %v65_v8, %s471_s29 }
  0x81   :  { %v44_v10 = vpop.permute.xlu1 %43  ;;  %v56_v11 = vpop.permute.xlu0 %55 }
  0x82   :  { %v51_v13 = vsub.f32 %v521_v2, %v44_v10  ;;  %v63_v14 = vsub.f32 %v521_v2, %v56_v11 }
  0x84   :  { %v66_v15 = vmul.f32 0.5, %v63_v14  ;;  %73 = vrot.lane.b32.xlu1 %v51_v13, %s471_s29 }
  0x86   :  { %87 = vrot.lane.b32.xlu2 %v67_v12, %s471_s29  ;;  %85 = vrot.lane.b32.xlu0 %v66_v15, %s471_s29 }
  0x8c   :  { %75 = vrot.lane.b32.xlu1 %v52_v17, %s471_s29 }
  0xd8   :  { %v84_v18 = vpop.permute.xlu2 %83 }
  0xe0   :  { %v88_v28 = vpop.permute.xlu2 %87 }
  0xee   :  { %v72_v19 = vpop.permute.xlu0 %71 }
  0xef   :  { %v93_v20 = vsel %vm92_vm0, %v72_v19, %v84_v18 }
  0xf0   :  { %v534_v21 = vsel %vm96_vm1, %v93_v20, %v50_v5 }
  0xf1   :  { %v101_v22 = vsel %vm100_vm2, %v534_v21, 0.0 }
  0xf2   :  { %102 = vadd.xlane.f32.xlu0 %v101_v22 }
  0xf6   :  { %v74_v23 = vpop.permute.xlu1 %73 }
  0xf8   :  { %v86_v24 = vpop.permute.xlu0 %85 }
  0xf9   :  { %v94_v25 = vsel %vm92_vm0, %v74_v23, %v86_v24 }
  0xfa   :  { %v540_v26 = vsel %vm96_vm1, %v94_v25, %v51_v13 }
  0xfb   :  { %v104_v27 = vsel %vm100_vm2, %v540_v26, 0.0 }
  0xfc   :  { %105 = vadd.xlane.f32.xlu1 %v104_v27 }
  0xfe   :  { %v76_v29 = vpop.permute.xlu1 %75 }
  0xff   :  { %v95_v30 = vsel %vm92_vm0, %v76_v29, %v88_v28 }
 0x100   :  { %v546_v31 = vsel %vm96_vm1, %v95_v30, %v52_v17 }
 0x101   :  { %v107_v32 = vsel %vm100_vm2, %v546_v31, 0.0 }
 0x102   :  { %108 = vadd.xlane.f32.xlu2 %v107_v32 }
 0x165   :  { %v103_v40 = vpop.xlane.xlu0 %102 }
 0x166   :  { %v117_v41 = vmul.f32 %v116_v39, %v103_v40 }
 0x168   :  { %v120_v42 = vsub.f32 %v534_v21, %v117_v41 }
 0x16a   :  { %v123_v43 = vmul.f32 %v120_v42, %v120_v42 }
 0x16c   :  { %v126_v44 = vsel %vm100_vm2, %v123_v43, 0.0 }
 0x16d   :  { %127 = vadd.xlane.f32.xlu2 %v126_v44 }
 0x16f   :  { %v106_v45 = vpop.xlane.xlu1 %105 }
 0x170   :  { %v118_v46 = vmul.f32 %v116_v39, %v106_v45  ;;  %v247_v45 = vpop.f32.mrf.mxu3 }
 0x172   :  { %v121_v47 = vsub.f32 %v540_v26, %v118_v46 }
 0x174   :  { %v124_v48 = vmul.f32 %v121_v47, %v121_v47  ;;  %v242_v47 = vpop.f32.mrf.mxu1 }
 0x175   :  { %v109_v49 = vpop.xlane.xlu2 %108 }
 0x176   :  { %v119_v50 = vmul.f32 %v116_v39, %v109_v49  ;;  %v129_v51 = vsel %vm100_vm2, %v124_v48, 0.0  ;;  %v251_v49 = vld [vmem:[%s600_s3] sm:$0xff] }
 0x177   :  { %130 = vadd.xlane.f32.xlu0 %v129_v51 }
 0x178   :  { %v122_v52 = vsub.f32 %v546_v31, %v119_v50  ;;  %v249_v46 = vpop.f32.mrf.mxu3 }
 0x17a   :  { %v125_v53 = vmul.f32 %v122_v52, %v122_v52 }
 0x17c   :  { %v132_v54 = vsel %vm100_vm2, %v125_v53, 0.0  ;;  %v244_v51 = vpop.f32.mrf.mxu1 }
 0x17d   :  { %133 = vadd.xlane.f32.xlu1 %v132_v54 }
 0x1e0   :  { %v128_v59 = vpop.xlane.xlu2 %127 }
 0x1e1   :  { %v135_v60 = vmul.f32 0.06666667, %v128_v59 }
 0x1e3   :  { %394 = vrsqrt.f32 %v135_v60  ;;  %vm145_vm4 = vcmp.eq.f32.partialorder %v135_v60, inf  ;;  %v148_v14 = vand.u32 2147483648, %v135_v60  ;;  %vm147_vm5 = vcmp.eq.f32.partialorder %v135_v60, 0.0 }
 0x1e9   :  { %v395_v61 = vpop.eup %394 }
 0x1ea   :  { %v139_v62 = vmul.f32 %v395_v61, %v135_v60  ;;  %v131_v63 = vpop.xlane.xlu0 %130 }
 0x1eb   :  { %v136_v3 = vmul.f32 0.06666667, %v131_v63 }
 0x1ec   :  { %v140_v4 = vmul.f32 %v395_v61, %v139_v62  ;;  %v473_v62 = vmov 32.0  }
 0x1ed   :  { %396 = vrsqrt.f32 %v136_v3  ;;  %vm157_vm6 = vcmp.eq.f32.partialorder %v136_v3, inf  ;;  %v160_v24 = vand.u32 2147483648, %v136_v3  ;;  %vm159_vm7 = vcmp.eq.f32.partialorder %v136_v3, 0.0 }
 0x1ee   :  { %v141_v0 = vmul.f32 0.5, %v140_v4 }
 0x1f0   :  { %v134_v2 = vpop.xlane.xlu1 %133  ;;  %v142_v1 = vsub.f32 1.5, %v141_v0 }
 0x1f1   :  { %v137_v5 = vmul.f32 0.06666667, %v134_v2 }
 0x1f2   :  { %v143_v6 = vmul.f32 %v395_v61, %v142_v1 }
 0x1f3   :  { %v397_v7 = vpop.eup %396  ;;  %398 = vrsqrt.f32 %v137_v5  ;;  %vm169_vm8 = vcmp.eq.f32.partialorder %v137_v5, inf  ;;  %v172_v33 = vand.u32 2147483648, %v137_v5  ;;  %vm171_vm9 = vcmp.eq.f32.partialorder %v137_v5, 0.0 }
 0x1f4   :  { %v151_v8 = vmul.f32 %v397_v7, %v136_v3  ;;  %v144_v9 = vmul.f32 %v143_v6, %v135_v60 }
 0x1f6   :  { %v152_v10 = vmul.f32 %v397_v7, %v151_v8  ;;  %v146_v11 = vsel %vm145_vm4, %v135_v60, %v144_v9 }
 0x1f7   :  { %v149_v17 = vsel %vm147_vm5, %v148_v14, %v146_v11 }
 0x1f8   :  { %v153_v12 = vmul.f32 0.5, %v152_v10  ;;  %v174_v22 = vadd.f32 1e-05, %v149_v17 }
 0x1f9   :  { %v399_v13 = vpop.eup %398 }
 0x1fa   :  { %v163_v15 = vmul.f32 %v399_v13, %v137_v5  ;;  %v154_v16 = vsub.f32 1.5, %v153_v12  ;;  %400 = vrcp.f32 %v174_v22 }
 0x1fc   :  { %v155_v18 = vmul.f32 %v397_v7, %v154_v16  ;;  %v164_v19 = vmul.f32 %v399_v13, %v163_v15 }
 0x1fe   :  { %v156_v20 = vmul.f32 %v155_v18, %v136_v3  ;;  %v165_v23 = vmul.f32 0.5, %v164_v19 }
 0x200   :  { %v158_v25 = vsel %vm157_vm6, %v136_v3, %v156_v20  ;;  %v166_v27 = vsub.f32 1.5, %v165_v23  ;;  %v401_v36 = vpop.eup %400 }
 0x201   :  { %v161_v28 = vsel %vm159_vm7, %v160_v24, %v158_v25  ;;  %v180_v39 = vmul.f32 %v401_v36, %v534_v21 }
 0x202   :  { %v175_v29 = vadd.f32 1e-05, %v161_v28  ;;  %v167_v30 = vmul.f32 %v399_v13, %v166_v27 }
 0x204   :  { %402 = vrcp.f32 %v175_v29  ;;  %v168_v32 = vmul.f32 %v167_v30, %v137_v5 }
 0x206   :  { %v170_v34 = vsel %vm169_vm8, %v137_v5, %v168_v32 }
 0x207   :  { %v173_v35 = vsel %vm171_vm9, %v172_v33, %v170_v34 }
 0x208   :  { %v176_v37 = vadd.f32 1e-05, %v173_v35 }
 0x20a   :  { %v403_v38 = vpop.eup %402  ;;  %404 = vrcp.f32 %v176_v37 }
 0x20b   :  { %v181_v40 = vmul.f32 %v403_v38, %v540_v26  ;;  %406 = vrcp.f32 %v473_v62 }
 0x20d   :  { %v187_v41 = vpack.c.bf16 %v181_v40, %v180_v39  ;;  %v390_v40 = vld [vmem:[%s600_s3 + $0x18] ss:$0 sm:$0xff] }
 0x20f   :  { %367 = vmatmul.msk.bf16.vlgmr.msra.gmra.mxu0 %vm100_vm2, %v187_v41 }
 0x210   :  { %v405_v42 = vpop.eup %404 }
 0x211   :  { %v182_v43 = vmul.f32 %v405_v42, %v546_v31  ;;  %v252_v31 = vld [vmem:[%s600_s3 + $0x8] sm:$0xff]  ;;  %v407_v63 = vpop.eup %406 }
 0x212   :  { %v268_v3 = vmul.f32 32.0, %v407_v63  ;;  %vm272_vm11 = vweird.f32 %v407_v63 }
 0x213   :  { %v188_v44 = vpack.c.bf16 %v182_v43, %v182_v43 }
 0x214   :  { %v269_v4 = vsub.f32 1.0, %v268_v3 }
 0x215   :  { %368 = vmatmul.msk.bf16.vlgmr.msra.gmra.mxu2 %vm100_vm2, %v188_v44  ;;  %v391_v44 = vld [vmem:[%s600_s3 + $0x19] ss:$0 sm:$0xff]  ;;  %s474_s3 = smov [#allocation5]  }
 0x216   :  { %v270_v0 = vmul.f32 %v407_v63, %v269_v4  ;;  %s348_s14 = sshll.u32 %s474_s3, 4  ;;  %s349_s14 = int_to_ptr.vmem [resolvable:$true] %s348_s14 }
 0x218   :  { %v271_v2 = vadd.f32 %v407_v63, %v270_v0 }
 0x21a   :  { %v273_v1 = vsel %vm272_vm11, %v407_v63, %v271_v2 }
 0x28c   :  { %v212_v48 = vpop.f32.mrf.mxu0 }
 0x28d   :  { %v243_v21 = vadd.f32 %v242_v47, %v212_v48 }
 0x28f   :  { %v254_v26 = vadd.f32 %v251_v49, %v243_v21 }
 0x291   :  { %v258_v50 = vsel %vm257_vm10, %v254_v26, 0.0 }
 0x292   :  { %259 = vadd.xlane.f32.xlu2 %v258_v50 }
 0x294   :  { %v214_v52 = vpop.f32.mrf.mxu0 }
 0x295   :  { %v245_v53 = vadd.f32 %v244_v51, %v214_v52 }
 0x297   :  { %v255_v54 = vadd.f32 %v252_v31, %v245_v53 }
 0x298   :  { %v217_v55 = vpop.f32.mrf.mxu2 }
 0x299   :  { %v248_v57 = vadd.f32 %v247_v45, %v217_v55  ;;  %v261_v58 = vsel %vm257_vm10, %v255_v54, 0.0 }
 0x29a   :  { %262 = vadd.xlane.f32.xlu0 %v261_v58 }
 0x29b   :  { %v256_v59 = vadd.f32 %v253_v56, %v248_v57 }
 0x29d   :  { %v264_v60 = vsel %vm257_vm10, %v256_v59, 0.0 }
 0x29e   :  { %265 = vadd.xlane.f32.xlu1 %v264_v60 }
 0x2a0   :  { %v219_v61 = vpop.f32.mrf.mxu2 }
 0x305   :  { %v260_v5 = vpop.xlane.xlu2 %259 }
 0x306   :  { %v274_v6 = vmul.f32 %v273_v1, %v260_v5 }
 0x308   :  { %v277_v7 = vsub.f32 %v254_v26, %v274_v6 }
 0x30a   :  { %v280_v8 = vmul.f32 %v277_v7, %v277_v7 }
 0x30c   :  { %v283_v9 = vsel %vm257_vm10, %v280_v8, 0.0 }
 0x30d   :  { %v263_v10 = vpop.xlane.xlu0 %262  ;;  %284 = vadd.xlane.f32.xlu2 %v283_v9 }
 0x30e   :  { %v275_v11 = vmul.f32 %v273_v1, %v263_v10 }
 0x310   :  { %v278_v12 = vsub.f32 %v255_v54, %v275_v11 }
 0x311   :  { %v266_v13 = vpop.xlane.xlu1 %265 }
 0x312   :  { %v276_v14 = vmul.f32 %v273_v1, %v266_v13  ;;  %v281_v15 = vmul.f32 %v278_v12, %v278_v12 }
 0x314   :  { %v279_v16 = vsub.f32 %v256_v59, %v276_v14  ;;  %v286_v17 = vsel %vm257_vm10, %v281_v15, 0.0 }
 0x315   :  { %287 = vadd.xlane.f32.xlu0 %v286_v17 }
 0x316   :  { %v282_v18 = vmul.f32 %v279_v16, %v279_v16 }
 0x318   :  { %v289_v19 = vsel %vm257_vm10, %v282_v18, 0.0 }
 0x319   :  { %290 = vadd.xlane.f32.xlu1 %v289_v19 }
 0x380   :  { %v285_v20 = vpop.xlane.xlu2 %284 }
 0x381   :  { %v292_v22 = vmul.f32 %v285_v20, %v273_v1 }
 0x383   :  { %v295_v23 = vadd.f32 1e-05, %v292_v22 }
 0x385   :  { %408 = vrsqrt.f32 %v295_v23  ;;  %vm304_vm13 = vweird.f32 %v295_v23 }
 0x388   :  { %v288_v24 = vpop.xlane.xlu0 %287 }
 0x389   :  { %v293_v25 = vmul.f32 %v288_v24, %v273_v1 }
 0x38b   :  { %v409_v27 = vpop.eup %408  ;;  %v296_v28 = vadd.f32 1e-05, %v293_v25 }
 0x38c   :  { %v299_v29 = vmul.f32 %v409_v27, %v295_v23  ;;  %v291_v30 = vpop.xlane.xlu1 %290  ;;  %vm305_vm12 = vweird.f32 %v409_v27 }
 0x38d   :  { %410 = vrsqrt.f32 %v296_v28  ;;  %v294_v32 = vmul.f32 %v291_v30, %v273_v1  ;;  %vm306_vm14 = vmor %vm304_vm13, %vm305_vm12  ;;  %vm314_vm0 = vweird.f32 %v296_v28 }
 0x38e   :  { %v300_v33 = vmul.f32 %v409_v27, %v299_v29 }
 0x38f   :  { %v297_v34 = vadd.f32 1e-05, %v294_v32 }
 0x390   :  { %v301_v35 = vmul.f32 0.5, %v300_v33 }
 0x391   :  { %412 = vrsqrt.f32 %v297_v34  ;;  %vm324_vm3 = vweird.f32 %v297_v34 }
 0x392   :  { %v302_v36 = vsub.f32 1.5, %v301_v35 }
 0x393   :  { %v411_v37 = vpop.eup %410 }
 0x394   :  { %v303_v38 = vmul.f32 %v409_v27, %v302_v36  ;;  %v309_v39 = vmul.f32 %v411_v37, %v296_v28  ;;  %vm315_vm15 = vweird.f32 %v411_v37 }
 0x395   :  { %vm316_vm1 = vmor %vm314_vm0, %vm315_vm15 }
 0x396   :  { %v307_v41 = vsel %vm306_vm14, %v409_v27, %v303_v38  ;;  %v310_v42 = vmul.f32 %v411_v37, %v309_v39 }
 0x397   :  { %v413_v43 = vpop.eup %412  ;;  %v328_v45 = vmul.f32 %v307_v41, %v277_v7 }
 0x398   :  { %v311_v46 = vmul.f32 0.5, %v310_v42  ;;  %v319_v47 = vmul.f32 %v413_v43, %v297_v34  ;;  %vm325_vm2 = vweird.f32 %v413_v43 }
 0x399   :  { %v333_v48 = vmul.f32 %v390_v40, %v328_v45  ;;  %vm326_vm4 = vmor %vm324_vm3, %vm325_vm2 }
 0x39a   :  { %v312_v49 = vsub.f32 1.5, %v311_v46  ;;  %v320_v21 = vmul.f32 %v413_v43, %v319_v47 }
 0x39b   :  { %v338_v26 = vadd.f32 %v391_v44, %v333_v48 }
 0x39c   :  { %v313_v50 = vmul.f32 %v411_v37, %v312_v49  ;;  %v321_v51 = vmul.f32 0.5, %v320_v21 }
 0x39d   :  { %341 = vst.msk [vmem:[#allocation5] sm:$0xff] %vm257_vm10, %v338_v26 }
 0x39e   :  { %v317_v52 = vsel %vm316_vm1, %v411_v37, %v313_v50  ;;  %v322_v31 = vsub.f32 1.5, %v321_v51 }
 0x39f   :  { %v329_v53 = vmul.f32 %v317_v52, %v278_v12 }
 0x3a0   :  { %v323_v54 = vmul.f32 %v413_v43, %v322_v31 }
 0x3a1   :  { %v334_v55 = vmul.f32 %v390_v40, %v329_v53 }
 0x3a2   :  { %v327_v56 = vsel %vm326_vm4, %v413_v43, %v323_v54 }
 0x3a3   :  { %v339_v57 = vadd.f32 %v391_v44, %v334_v55  ;;  %v330_v58 = vmul.f32 %v327_v56, %v279_v16 }
 0x3a5   :  { %342 = vst.msk [vmem:[#allocation5 + $0x8] sm:$0xff] %vm257_vm10, %v339_v57  ;;  %v335_v59 = vmul.f32 %v390_v40, %v330_v58 }
 0x3a7   :  { %v340_v60 = vadd.f32 %v391_v44, %v335_v59 }
 0x3a9   :  { %343 = vst.msk [vmem:[#allocation5 + $0x10] sm:$0xff] %vm257_vm10, %v340_v60 }
 0x3aa   :  { %356 = dma.vmem_to_hbm [thread:$0]  %s349_s14, 384, %s351_s17, [#allocation4], %s475_s18, %s475_s18, %s476_s19  }
 0x3ab   :  { %464 = dma.done.wait [#allocation4], 384  }
 0x3ac   :  { %465 = vsyncadd [#allocation4], 4294966912 }
 0x3ad   :  { %361 = vsyncpa [#allocation3], 1 }
 0x3ae   :  { %362 = vsyncpa [#allocation4], 1 }

</bundles_post_ra>
